<compile_context>
chip_gen: v6e
topology: v6e:2x2x1
jax: 0.10.0
libtpu: 0.0.40
codegen_flags: <defaults>
</compile_context>

<pallas_src>
import functools

import jax
import jax.numpy as jnp
from jax import lax
from jax.experimental import pallas as pl
from jax.experimental.pallas import tpu as pltpu

VMEM_LIMIT_BYTES = 64 * 1024 * 1024  # raised scoped-VMEM limit (tiles stay small)


# ---------------------------------------------------------------------------
# Configs (mirroring the PyTorch config classes, small synthetic sizes)
# ---------------------------------------------------------------------------
class SiglipVisionConfig:
    def __init__(self, hidden_size, image_size, patch_size, num_channels=3, **kw):
        self.hidden_size = hidden_size
        self.image_size = image_size
        self.patch_size = patch_size
        self.num_channels = num_channels
        self.projection_dim = None  # set by PaliGemmaConfig


class GemmaConfig:
    def __init__(self, vocab_size, hidden_size, intermediate_size,
                 num_hidden_layers, num_attention_heads, num_key_value_heads,
                 head_dim=256, max_position_embeddings=8192, rms_norm_eps=1e-6,
                 rope_theta=10000.0, attention_bias=False, attention_dropout=0.0,
                 pad_token_id=None, **kw):
        self.vocab_size = vocab_size
        self.hidden_size = hidden_size
        self.intermediate_size = intermediate_size
        self.num_hidden_layers = num_hidden_layers
        self.num_attention_heads = num_attention_heads
        self.key_value_heads = num_key_value_heads
        self.head_dim = head_dim
        self.max_position_embeddings = max_position_embeddings
        self.rms_norm_eps = rms_norm_eps
        self.rope_theta = rope_theta
        self.attention_bias = attention_bias
        self.attention_dropout = attention_dropout
        self.pad_token_id = pad_token_id


class PaliGemmaConfig:
    def __init__(self, vision_config, text_config, ignore_index=-100,
                 image_token_index=100, vocab_size=128, projection_dim=32,
                 hidden_size=32, pad_token_id=None, **kw):
        self.ignore_index = ignore_index
        self.image_token_index = image_token_index
        self.projection_dim = projection_dim
        self.hidden_size = hidden_size
        self.pad_token_id = pad_token_id
        self.is_encoder_decoder = False
        self.vision_config = SiglipVisionConfig(**vision_config)
        self.text_config = GemmaConfig(**text_config, pad_token_id=pad_token_id)
        self.vocab_size = self.text_config.vocab_size
        self.text_config.num_image_tokens = (
            self.vision_config.image_size // self.vision_config.patch_size) ** 2
        self.vision_config.projection_dim = projection_dim


# ---------------------------------------------------------------------------
# Helpers
# ---------------------------------------------------------------------------
def _round_up(x, m):
    return (x + m - 1) // m * m


def _pad2d(a, rows, cols):
    r, c = a.shape
    if (r, c) == (rows, cols):
        return a
    return jnp.pad(a, ((0, rows - r), (0, cols - c)))


# ---------------------------------------------------------------------------
# Tiled matmul kernels (f32 accumulator, K as last "arbitrary" grid axis)
# ---------------------------------------------------------------------------
def _matmul_kernel(x_ref, w_ref, o_ref, acc_ref):
    @pl.when(pl.program_id(2) == 0)
    def _():
        acc_ref[...] = jnp.zeros_like(acc_ref)

    acc_ref[...] += jnp.dot(x_ref[...], w_ref[...],
                            preferred_element_type=jnp.float32)

    @pl.when(pl.program_id(2) == pl.num_programs(2) - 1)
    def _():
        o_ref[...] = acc_ref[...].astype(o_ref.dtype)


def _matmul_bias_kernel(x_ref, w_ref, b_ref, o_ref, acc_ref):
    @pl.when(pl.program_id(2) == 0)
    def _():
        acc_ref[...] = jnp.zeros_like(acc_ref)

    acc_ref[...] += jnp.dot(x_ref[...], w_ref[...],
                            preferred_element_type=jnp.float32)

    @pl.when(pl.program_id(2) == pl.num_programs(2) - 1)
    def _():
        o_ref[...] = (acc_ref[...]
                      + b_ref[...].astype(jnp.float32)).astype(o_ref.dtype)


def pallas_matmul(x, w, b=None, out_dtype=None, tm=256, tn=512, tk=512):
    """y = x @ w (+ b).  x:[M,K], w:[K,N] (pre-transposed [in,out]), b:[N]|None."""
    M, K = x.shape
    Kw, N = w.shape
    assert K == Kw
    out_dtype = out_dtype or x.dtype
    if x.dtype != w.dtype:
        x = x.astype(w.dtype)

    # Clamp tiles to the (sublane/lane aligned) problem size, pad inputs so
    # every block is either aligned or full-dim; zero padding is exact for a
    # matmul and padded rows/cols are sliced off at the end.
    tm = min(tm, _round_up(M, 16))
    tk = min(tk, _round_up(K, 128))
    tn = min(tn, _round_up(N, 128))
    Mp, Kp, Np = _round_up(M, tm), _round_up(K, tk), _round_up(N, tn)
    xp, wp = _pad2d(x, Mp, Kp), _pad2d(w, Kp, Np)

    in_specs = [pl.BlockSpec((tm, tk), lambda i, j, k: (i, k)),
                pl.BlockSpec((tk, tn), lambda i, j, k: (k, j))]
    args = [xp, wp]
    if b is None:
        kernel = _matmul_kernel          # no vocab-sized zero-bias stream
    else:
        kernel = _matmul_bias_kernel
        in_specs.append(pl.BlockSpec((1, tn), lambda i, j, k: (0, j)))
        args.append(_pad2d(b.reshape(1, N), 1, Np))

    out = pl.pallas_call(
        kernel,
        out_shape=jax.ShapeDtypeStruct((Mp, Np), out_dtype),
        grid=(Mp // tm, Np // tn, Kp // tk),
        in_specs=in_specs,
        out_specs=pl.BlockSpec((tm, tn), lambda i, j, k: (i, j)),
        scratch_shapes=[pltpu.VMEM((tm, tn), jnp.float32)],
        compiler_params=pltpu.CompilerParams(
            dimension_semantics=("parallel", "parallel", "arbitrary"),
            vmem_limit_bytes=VMEM_LIMIT_BYTES),
    )(*args)
    if (Mp, Np) != (M, N):
        out = out[:M, :N]
    return out


# ---------------------------------------------------------------------------
# Row-tiled LayerNorm (vision post-layernorm)
# ---------------------------------------------------------------------------
def _layernorm_kernel(x_ref, g_ref, b_ref, o_ref, *, eps):
    x = x_ref[...].astype(jnp.float32)
    mu = jnp.mean(x, axis=-1, keepdims=True)
    xc = x - mu
    var = jnp.mean(xc * xc, axis=-1, keepdims=True)
    xn = xc * lax.rsqrt(var + eps)
    o_ref[...] = (xn * g_ref[...].astype(jnp.float32)
                  + b_ref[...].astype(jnp.float32)).astype(o_ref.dtype)


def pallas_layernorm(x2d, g, b, eps, tm=512):
    M, D = x2d.shape
    tm = min(tm, _round_up(M, 16))
    Mp = _round_up(M, tm)
    xp = _pad2d(x2d, Mp, D)
    out = pl.pallas_call(
        functools.partial(_layernorm_kernel, eps=eps),
        out_shape=jax.ShapeDtypeStruct((Mp, D), x2d.dtype),
        grid=(Mp // tm,),
        in_specs=[pl.BlockSpec((tm, D), lambda i: (i, 0)),
                  pl.BlockSpec((1, D), lambda i: (0, 0)),
                  pl.BlockSpec((1, D), lambda i: (0, 0))],
        out_specs=pl.BlockSpec((tm, D), lambda i: (i, 0)),
        compiler_params=pltpu.CompilerParams(
            dimension_semantics=("parallel",),
            vmem_limit_bytes=VMEM_LIMIT_BYTES),
    )(xp, g.reshape(1, D), b.reshape(1, D))
    return out[:M] if Mp != M else out


# ---------------------------------------------------------------------------
# Fused: merge(text/image/pad) + sqrt(D) normalizer + final RMSNorm + lm_head
# ---------------------------------------------------------------------------
def _merge_norm_lmhead_kernel(ids_ref, emb_ref, img_ref, nw_ref, w_ref, o_ref, *,
                              image_token, pad_token, img_scale, normalizer, eps):
    ids = ids_ref[...]                                            # [tm, 1] int32
    text_mask = jnp.logical_and(ids != image_token, ids != pad_token)
    image_mask = ids == image_token

    emb = emb_ref[...].astype(jnp.float32)
    img = img_ref[...].astype(jnp.float32) * img_scale            # scaled img feats
    h = jnp.where(text_mask, emb, jnp.zeros_like(emb))
    h = jnp.where(image_mask, img, h)                             # pad rows stay 0
    h = h * normalizer                                            # GemmaModel sqrt(D)

    # TODO(synk): GemmaDecoderLayer is an empty stub in the reference source
    # (no forward / parameters defined), so decoder layers act as identity.

    var = jnp.mean(h * h, axis=-1, keepdims=True)                 # Gemma RMSNorm
    hn = h * lax.rsqrt(var + eps)
    hn = hn * (1.0 + nw_ref[...].astype(jnp.float32))

    o_ref[...] = jnp.dot(hn.astype(w_ref.dtype), w_ref[...],
                         preferred_element_type=jnp.float32).astype(o_ref.dtype)


def pallas_merge_norm_lmhead(ids2d, emb2d, img2d, norm_w, lm_w, *,
                             image_token, pad_token, img_scale, normalizer, eps,
                             tm=256, tn=512):
    """[B*S] ids, [B*S,D] embeds / gathered image feats -> f32 logits [B*S,V]."""
    M, D = emb2d.shape
    Dw, N = lm_w.shape
    assert D == Dw
    tm = min(tm, _round_up(M, 16))
    tn = min(tn, _round_up(N, 128))
    Mp, Np = _round_up(M, tm), _round_up(N, tn)

    ids_p = _pad2d(ids2d, Mp, 1)
    emb_p = _pad2d(emb2d, Mp, D)
    img_p = _pad2d(img2d, Mp, D)
    w_p = _pad2d(lm_w, D, Np)

    kernel = functools.partial(
        _merge_norm_lmhead_kernel, image_token=image_token, pad_token=pad_token,
        img_scale=img_scale, normalizer=normalizer, eps=eps)

    out = pl.pallas_call(
        kernel,
        out_shape=jax.ShapeDtypeStruct((Mp, Np), jnp.float32),    # f32 logits
        grid=(Mp // tm, Np // tn),
        in_specs=[pl.BlockSpec((tm, 1), lambda i, j: (i, 0)),     # input_ids
                  pl.BlockSpec((tm, D), lambda i, j: (i, 0)),     # text embeds
                  pl.BlockSpec((tm, D), lambda i, j: (i, 0)),     # image feats
                  pl.BlockSpec((1, D), lambda i, j: (0, 0)),      # rmsnorm weight
                  pl.BlockSpec((D, tn), lambda i, j: (0, j))],    # lm_head weight
        out_specs=pl.BlockSpec((tm, tn), lambda i, j: (i, j)),
        compiler_params=pltpu.CompilerParams(
            dimension_semantics=("parallel", "parallel"),
            vmem_limit_bytes=VMEM_LIMIT_BYTES),
    )(ids_p, emb_p, img_p, norm_w.reshape(1, D), w_p)
    if (Mp, Np) != (M, N):
        out = out[:M, :N]
    return out


# ---------------------------------------------------------------------------
# Model forward
# ---------------------------------------------------------------------------
def paligemma_forward(params, cfg, input_ids, pixel_values, attention_mask):
    tcfg, vcfg = cfg.text_config, cfg.vision_config
    B, S = input_ids.shape
    D = tcfg.hidden_size
    wdtype = params["embed_tokens"].dtype

    # --- 1. token embeddings (nn.Embedding lookup) --------------------------
    inputs_embeds = jnp.take(params["embed_tokens"], input_ids, axis=0)   # [B,S,D]

    # --- 2. vision tower: SigLIP patch embedding as a tiled Pallas matmul ----
    # Conv2d(kernel=patch, stride=patch) == patch-extract + matmul.
    # TODO(synk): SiglipVisionModule's transformer encoder layers are not
    # defined in the reference source; only patch-embed + pos-embed +
    # post-layernorm are implemented here.
    pixel_values = pixel_values.astype(wdtype)          # .to(inputs_embeds.dtype)
    p = vcfg.patch_size
    Bv, C, H, W = pixel_values.shape
    nH, nW = H // p, W // p
    # NHWC patch extraction keeps the matmul K dim (p*p*C) lane-contiguous.
    patches = jnp.transpose(pixel_values, (0, 2, 3, 1))                # [B,H,W,C]
    patches = patches.reshape(Bv, nH, p, nW, p, C)
    patches = patches.transpose(0, 1, 3, 2, 4, 5).reshape(Bv * nH * nW, p * p * C)
    vh = vcfg.hidden_size
    x = pallas_matmul(patches, params["patch_w"], params["patch_b"])
    x = x.reshape(Bv, nH * nW, vh) + params["pos_embed"][None]
    x = pallas_layernorm(x.reshape(-1, vh), params["vis_ln_g"],
                         params["vis_ln_b"], 1e-6)

    # --- 3. multimodal projector (Linear with bias) --------------------------
    proj = vcfg.projection_dim
    image_features = pallas_matmul(x, params["proj_w"], params["proj_b"])
    image_features = image_features.reshape(Bv, nH * nW, proj)        # [B,Nimg,D]

    # --- 4+5. merge image/text embeddings, sqrt(D) scaling, final RMSNorm and
    # lm_head — fused into a single Pallas kernel (one pass over [B*S, D]).
    pad_token_id = cfg.pad_token_id if cfg.pad_token_id is not None else -1
    n_img = image_features.shape[1]
    image_mask = input_ids == cfg.image_token_index
    # masked_scatter equivalent: the i-th image placeholder in each batch row
    # receives the i-th image feature (ordered scatter).
    img_idx = jnp.clip(jnp.cumsum(image_mask.astype(jnp.int32), axis=-1) - 1,
                       0, n_img - 1)
    gathered = jnp.take_along_axis(image_features, img_idx[..., None], axis=1)

    # causal mask (kv_cache is None -> zeros [B,1,S,S]) and position ids are
    # consumed only by the stub decoder layers.
    causal_mask = jnp.zeros((B, 1, S, S), dtype=wdtype)
    csum = jnp.cumsum(attention_mask, axis=-1)
    position_ids = jnp.where(attention_mask == 0, 1, csum)
    del causal_mask, position_ids

    logits2d = pallas_merge_norm_lmhead(
        input_ids.reshape(B * S, 1).astype(jnp.int32),
        inputs_embeds.reshape(B * S, D),
        gathered.reshape(B * S, D),
        params["final_norm_w"], params["lm_head_w"],
        image_token=int(cfg.image_token_index), pad_token=int(pad_token_id),
        img_scale=1.0 / float(cfg.hidden_size ** 0.5),
        normalizer=float(tcfg.hidden_size ** 0.5),
        eps=float(tcfg.rms_norm_eps))
    return {"logits": logits2d.reshape(B, S, -1)}


# ---------------------------------------------------------------------------
# Deterministic parameter initialization (bf16 weights, f32 MXU accumulation)
# ---------------------------------------------------------------------------
def init_params(cfg, key, dtype=jnp.bfloat16):
    tcfg, vcfg = cfg.text_config, cfg.vision_config
    C, p = vcfg.num_channels, vcfg.patch_size
    n_patches = (vcfg.image_size // p) ** 2
    keys = jax.random.split(key, 8)
    s = 0.02
    return {
        "embed_tokens": (s * jax.random.normal(keys[0], (tcfg.vocab_size, tcfg.hidden_size))).astype(dtype),
        # SigLIP patch-embed conv weight flattened to [p*p*C, vh] (NHWC patch order)
        "patch_w":      (s * jax.random.normal(keys[1], (p * p * C, vcfg.hidden_size))).astype(dtype),
        "patch_b":      jnp.zeros((vcfg.hidden_size,), dtype),
        "pos_embed":    (s * jax.random.normal(keys[2], (n_patches, vcfg.hidden_size))).astype(dtype),
        "vis_ln_g":     jnp.ones((vcfg.hidden_size,), dtype),
        "vis_ln_b":     jnp.zeros((vcfg.hidden_size,), dtype),
        "proj_w":       (s * jax.random.normal(keys[3], (vcfg.hidden_size, vcfg.projection_dim))).astype(dtype),
        "proj_b":       jnp.zeros((vcfg.projection_dim,), dtype),
        "final_norm_w": jnp.zeros((tcfg.hidden_size,), dtype),   # Gemma (1+w) init
        "lm_head_w":    (s * jax.random.normal(keys[4], (tcfg.hidden_size, tcfg.vocab_size))).astype(dtype),
    }


# ---------------------------------------------------------------------------
if __name__ == "__main__":
    cfg = PaliGemmaConfig(
        vision_config=dict(hidden_size=32, image_size=16, patch_size=4, num_channels=3),
        text_config=dict(vocab_size=128, hidden_size=32, intermediate_size=64,
                         num_hidden_layers=2, num_attention_heads=4,
                         num_key_value_heads=1, head_dim=8, rms_norm_eps=1e-6),
        image_token_index=100, vocab_size=128, projection_dim=32, hidden_size=32,
        pad_token_id=None,
    )

    key = jax.random.PRNGKey(0)
    k_param, k_pix, k_ids = jax.random.split(key, 3)
    params = init_params(cfg, k_param, dtype=jnp.bfloat16)

    B = 2
    n_img = cfg.text_config.num_image_tokens        # 16 image tokens
    n_txt = 8
    S = n_img + n_txt                                # seq = 24

    pixel_values = jax.random.normal(
        k_pix, (B, cfg.vision_config.num_channels,
                cfg.vision_config.image_size, cfg.vision_config.image_size),
        dtype=jnp.float32)
    text_ids = jax.random.randint(k_ids, (B, n_txt), 0, cfg.image_token_index)
    image_ids = jnp.full((B, n_img), cfg.image_token_index, dtype=jnp.int32)
    input_ids = jnp.concatenate([image_ids, text_ids.astype(jnp.int32)], axis=1)
    attention_mask = jnp.ones((B, S), dtype=jnp.int32)

    fwd = jax.jit(lambda ids, pix, am: paligemma_forward(params, cfg, ids, pix, am))
    out = fwd(input_ids, pixel_values, attention_mask)
    jax.block_until_ready(out["logits"])
    assert out["logits"].shape == (B, S, cfg.vocab_size)
    assert out["logits"].dtype == jnp.float32
    print("KERNEL_OK")
</pallas_src>

<mosaic_0001>
module attributes {stable_mosaic.version = 11 : i64} {
  func.func @_layernorm_kernel(%arg0: i32, %arg1: memref<32x32xbf16, #tpu.memory_space<vmem>>, %arg2: memref<1x32xbf16, #tpu.memory_space<vmem>>, %arg3: memref<1x32xbf16, #tpu.memory_space<vmem>>, %arg4: memref<32x32xbf16, #tpu.memory_space<vmem>>) attributes {dimension_semantics = [#tpu.dimension_semantics<parallel>], iteration_bounds = array<i64: 1>, scalar_prefetch = 0 : i64, scratch_operands = 0 : i64, tpu.core_type = #tpu.core_type<tc>, window_params = [{transform_indices = @transform_0, window_bounds = array<i64: 32, 32>}, {pipeline_mode = #tpu.pipeline_mode<synchronous>, transform_indices = @transform_1, window_bounds = array<i64: 1, 32>}, {pipeline_mode = #tpu.pipeline_mode<synchronous>, transform_indices = @transform_2, window_bounds = array<i64: 1, 32>}, {transform_indices = @transform_3, window_bounds = array<i64: 32, 32>}]} {
    %c0 = arith.constant 0 : index
    %c0_0 = arith.constant 0 : index
    %0 = vector.load %arg1[%c0, %c0_0] : memref<32x32xbf16, #tpu.memory_space<vmem>>, vector<32x32xbf16>
    %1 = arith.extf %0 : vector<32x32xbf16> to vector<32x32xf32>
    %cst = arith.constant dense<0.000000e+00> : vector<32xf32>
    %2 = vector.multi_reduction <add>, %1, %cst [1] : vector<32x32xf32> to vector<32xf32>
    %3 = vector.shape_cast %2 : vector<32xf32> to vector<32x1xf32>
    %cst_1 = arith.constant 3.200000e+01 : f32
    %4 = vector.broadcast %cst_1 : f32 to vector<32x1xf32>
    %5 = arith.divf %3, %4 : vector<32x1xf32>
    %6 = vector.broadcast %5 : vector<32x1xf32> to vector<32x32xf32>
    %7 = arith.subf %1, %6 : vector<32x32xf32>
    %8 = arith.mulf %7, %7 : vector<32x32xf32>
    %cst_2 = arith.constant dense<0.000000e+00> : vector<32xf32>
    %9 = vector.multi_reduction <add>, %8, %cst_2 [1] : vector<32x32xf32> to vector<32xf32>
    %10 = vector.shape_cast %9 : vector<32xf32> to vector<32x1xf32>
    %cst_3 = arith.constant 3.200000e+01 : f32
    %11 = vector.broadcast %cst_3 : f32 to vector<32x1xf32>
    %12 = arith.divf %10, %11 : vector<32x1xf32>
    %cst_4 = arith.constant 9.99999997E-7 : f32
    %13 = vector.broadcast %cst_4 : f32 to vector<32x1xf32>
    %14 = arith.addf %12, %13 : vector<32x1xf32>
    %15 = math.rsqrt %14 : vector<32x1xf32>
    %16 = vector.broadcast %15 : vector<32x1xf32> to vector<32x32xf32>
    %17 = arith.mulf %7, %16 : vector<32x32xf32>
    %c0_5 = arith.constant 0 : index
    %c0_6 = arith.constant 0 : index
    %18 = vector.load %arg2[%c0_5, %c0_6] : memref<1x32xbf16, #tpu.memory_space<vmem>>, vector<1x32xbf16>
    %19 = arith.extf %18 : vector<1x32xbf16> to vector<1x32xf32>
    %20 = vector.broadcast %19 : vector<1x32xf32> to vector<32x32xf32>
    %21 = arith.mulf %17, %20 : vector<32x32xf32>
    %c0_7 = arith.constant 0 : index
    %c0_8 = arith.constant 0 : index
    %22 = vector.load %arg3[%c0_7, %c0_8] : memref<1x32xbf16, #tpu.memory_space<vmem>>, vector<1x32xbf16>
    %23 = arith.extf %22 : vector<1x32xbf16> to vector<1x32xf32>
    %24 = vector.broadcast %23 : vector<1x32xf32> to vector<32x32xf32>
    %25 = arith.addf %21, %24 : vector<32x32xf32>
    %26 = arith.truncf %25 : vector<32x32xf32> to vector<32x32xbf16>
    %c0_9 = arith.constant 0 : index
    %c0_10 = arith.constant 0 : index
    %27 = vector.load %arg4[%c0_9, %c0_10] : memref<32x32xbf16, #tpu.memory_space<vmem>>, vector<32x32xbf16>
    tpu.vector_store %arg4[%c0_9, %c0_10], %26 {strides = array<i32>} : memref<32x32xbf16, #tpu.memory_space<vmem>>, vector<32x32xbf16>,
    return
  }
  func.func @transform_0(%arg0: i32) -> (i32, i32) {
    %c0_i32 = arith.constant 0 : i32
    %c0_i32_0 = arith.constant 0 : i32
    return %arg0, %c0_i32 : i32, i32
  }
  func.func @transform_1(%arg0: i32) -> (i32, i32) {
    %c0_i32 = arith.constant 0 : i32
    %c0_i32_0 = arith.constant 0 : i32
    %c0_i32_1 = arith.constant 0 : i32
    return %c0_i32, %c0_i32_0 : i32, i32
  }
  func.func @transform_2(%arg0: i32) -> (i32, i32) {
    %c0_i32 = arith.constant 0 : i32
    %c0_i32_0 = arith.constant 0 : i32
    %c0_i32_1 = arith.constant 0 : i32
    return %c0_i32, %c0_i32_0 : i32, i32
  }
  func.func @transform_3(%arg0: i32) -> (i32, i32) {
    %c0_i32 = arith.constant 0 : i32
    %c0_i32_0 = arith.constant 0 : i32
    return %arg0, %c0_i32 : i32, i32
  }
}

module attributes {stable_mosaic.version = 11 : i64} {
  func.func @_matmul_bias_kernel(%arg0: i32, %arg1: i32, %arg2: i32, %arg3: memref<32x128xbf16, #tpu.memory_space<vmem>>, %arg4: memref<128x128xbf16, #tpu.memory_space<vmem>>, %arg5: memref<1x128xbf16, #tpu.memory_space<vmem>>, %arg6: memref<32x128xbf16, #tpu.memory_space<vmem>>, %arg7: memref<32x128xf32, #tpu.memory_space<vmem>>) attributes {dimension_semantics = [#tpu.dimension_semantics<parallel>, #tpu.dimension_semantics<parallel>, #tpu.dimension_semantics<arbitrary>], iteration_bounds = array<i64: 1, 1, 1>, scalar_prefetch = 0 : i64, scratch_operands = 1 : i64, tpu.core_type = #tpu.core_type<tc>, window_params = [{transform_indices = @transform_0, window_bounds = array<i64: 32, 128>}, {transform_indices = @transform_1, window_bounds = array<i64: 128, 128>}, {transform_indices = @transform_2, window_bounds = array<i64: 1, 128>}, {transform_indices = @transform_3, window_bounds = array<i64: 32, 128>}]} {
    %c0_i32 = arith.constant 0 : i32
    %0 = arith.cmpi eq, %arg2, %c0_i32 : i32
    %1 = arith.extui %0 : i1 to i32
    %c0_i32_0 = arith.constant 0 : i32
    %2 = arith.cmpi ne, %1, %c0_i32_0 : i32
    scf.if %2 {
      %cst_10 = arith.constant 0.000000e+00 : f32
      %12 = vector.broadcast %cst_10 : f32 to vector<32x128xf32>
      %c0_11 = arith.constant 0 : index
      %c0_12 = arith.constant 0 : index
      %13 = vector.load %arg7[%c0_11, %c0_12] : memref<32x128xf32, #tpu.memory_space<vmem>>, vector<32x128xf32>
      tpu.vector_store %arg7[%c0_11, %c0_12], %12 {strides = array<i32>} : memref<32x128xf32, #tpu.memory_space<vmem>>, vector<32x128xf32>,
    } else {
    }
    %c0 = arith.constant 0 : index
    %c0_1 = arith.constant 0 : index
    %3 = vector.load %arg7[%c0, %c0_1] : memref<32x128xf32, #tpu.memory_space<vmem>>, vector<32x128xf32>
    %c0_2 = arith.constant 0 : index
    %c0_3 = arith.constant 0 : index
    %4 = vector.load %arg3[%c0_2, %c0_3] : memref<32x128xbf16, #tpu.memory_space<vmem>>, vector<32x128xbf16>
    %c0_4 = arith.constant 0 : index
    %c0_5 = arith.constant 0 : index
    %5 = vector.load %arg4[%c0_4, %c0_5] : memref<128x128xbf16, #tpu.memory_space<vmem>>, vector<128x128xbf16>
    %cst = arith.constant dense<0.000000e+00> : vector<32x128xf32>
    %6 = tpu.matmul %4, %5, %cst {dimension_numbers = #tpu.dot_dimension_numbers<[1], [0], [0], [1], [0, 0, 1, 1], [], []>} : vector<32x128xbf16>, vector<128x128xbf16>, vector<32x128xf32> -> vector<32x128xf32>
    %7 = arith.addf %3, %6 : vector<32x128xf32>
    %c0_6 = arith.constant 0 : index
    %c0_7 = arith.constant 0 : index
    %8 = vector.load %arg7[%c0_6, %c0_7] : memref<32x128xf32, #tpu.memory_space<vmem>>, vector<32x128xf32>
    tpu.vector_store %arg7[%c0_6, %c0_7], %7 {strides = array<i32>} : memref<32x128xf32, #tpu.memory_space<vmem>>, vector<32x128xf32>,
    %c0_i32_8 = arith.constant 0 : i32
    %9 = arith.cmpi eq, %arg2, %c0_i32_8 : i32
    %10 = arith.extui %9 : i1 to i32
    %c0_i32_9 = arith.constant 0 : i32
    %11 = arith.cmpi ne, %10, %c0_i32_9 : i32
    scf.if %11 {
      %c0_10 = arith.constant 0 : index
      %c0_11 = arith.constant 0 : index
      %12 = vector.load %arg7[%c0_10, %c0_11] : memref<32x128xf32, #tpu.memory_space<vmem>>, vector<32x128xf32>
      %c0_12 = arith.constant 0 : index
      %c0_13 = arith.constant 0 : index
      %13 = vector.load %arg5[%c0_12, %c0_13] : memref<1x128xbf16, #tpu.memory_space<vmem>>, vector<1x128xbf16>
      %14 = arith.extf %13 : vector<1x128xbf16> to vector<1x128xf32>
      %15 = vector.broadcast %14 : vector<1x128xf32> to vector<32x128xf32>
      %16 = arith.addf %12, %15 : vector<32x128xf32>
      %17 = arith.truncf %16 : vector<32x128xf32> to vector<32x128xbf16>
      %c0_14 = arith.constant 0 : index
      %c0_15 = arith.constant 0 : index
      %18 = vector.load %arg6[%c0_14, %c0_15] : memref<32x128xbf16, #tpu.memory_space<vmem>>, vector<32x128xbf16>
      tpu.vector_store %arg6[%c0_14, %c0_15], %17 {strides = array<i32>} : memref<32x128xbf16, #tpu.memory_space<vmem>>, vector<32x128xbf16>,
    } else {
    }
    return
  }
  func.func @transform_0(%arg0: i32, %arg1: i32, %arg2: i32) -> (i32, i32) {
    %c0_i32 = arith.constant 0 : i32
    return %arg0, %arg2 : i32, i32
  }
  func.func @transform_1(%arg0: i32, %arg1: i32, %arg2: i32) -> (i32, i32) {
    %c0_i32 = arith.constant 0 : i32
    return %arg2, %arg1 : i32, i32
  }
  func.func @transform_2(%arg0: i32, %arg1: i32, %arg2: i32) -> (i32, i32) {
    %c0_i32 = arith.constant 0 : i32
    %c0_i32_0 = arith.constant 0 : i32
    return %c0_i32, %arg1 : i32, i32
  }
  func.func @transform_3(%arg0: i32, %arg1: i32, %arg2: i32) -> (i32, i32) {
    %c0_i32 = arith.constant 0 : i32
    return %arg0, %arg1 : i32, i32
  }
}

module attributes {stable_mosaic.version = 11 : i64} {
  func.func @_merge_norm_lmhead_kernel(%arg0: i32, %arg1: i32, %arg2: memref<48x1xi32, #tpu.memory_space<vmem>>, %arg3: memref<48x32xbf16, #tpu.memory_space<vmem>>, %arg4: memref<48x32xbf16, #tpu.memory_space<vmem>>, %arg5: memref<1x32xbf16, #tpu.memory_space<vmem>>, %arg6: memref<32x128xbf16, #tpu.memory_space<vmem>>, %arg7: memref<48x128xf32, #tpu.memory_space<vmem>>) attributes {dimension_semantics = [#tpu.dimension_semantics<parallel>, #tpu.dimension_semantics<parallel>], iteration_bounds = array<i64: 1, 1>, scalar_prefetch = 0 : i64, scratch_operands = 0 : i64, tpu.core_type = #tpu.core_type<tc>, window_params = [{transform_indices = @transform_0, window_bounds = array<i64: 48, 1>}, {transform_indices = @transform_1, window_bounds = array<i64: 48, 32>}, {transform_indices = @transform_2, window_bounds = array<i64: 48, 32>}, {pipeline_mode = #tpu.pipeline_mode<synchronous>, transform_indices = @transform_3, window_bounds = array<i64: 1, 32>}, {transform_indices = @transform_4, window_bounds = array<i64: 32, 128>}, {transform_indices = @transform_5, window_bounds = array<i64: 48, 128>}]} {
    %c0 = arith.constant 0 : index
    %c0_0 = arith.constant 0 : index
    %0 = vector.load %arg2[%c0, %c0_0] : memref<48x1xi32, #tpu.memory_space<vmem>>, vector<48x1xi32>
    %c100_i32 = arith.constant 100 : i32
    %1 = vector.broadcast %c100_i32 : i32 to vector<48x1xi32>
    %2 = arith.cmpi ne, %0, %1 : vector<48x1xi32>
    %c-1_i32 = arith.constant -1 : i32
    %3 = vector.broadcast %c-1_i32 : i32 to vector<48x1xi32>
    %4 = arith.cmpi ne, %0, %3 : vector<48x1xi32>
    %5 = arith.andi %2, %4 : vector<48x1xi1>
    %c100_i32_1 = arith.constant 100 : i32
    %6 = vector.broadcast %c100_i32_1 : i32 to vector<48x1xi32>
    %7 = arith.cmpi eq, %0, %6 : vector<48x1xi32>
    %c0_2 = arith.constant 0 : index
    %c0_3 = arith.constant 0 : index
    %8 = vector.load %arg3[%c0_2, %c0_3] : memref<48x32xbf16, #tpu.memory_space<vmem>>, vector<48x32xbf16>
    %9 = arith.extf %8 : vector<48x32xbf16> to vector<48x32xf32>
    %c0_4 = arith.constant 0 : index
    %c0_5 = arith.constant 0 : index
    %10 = vector.load %arg4[%c0_4, %c0_5] : memref<48x32xbf16, #tpu.memory_space<vmem>>, vector<48x32xbf16>
    %11 = arith.extf %10 : vector<48x32xbf16> to vector<48x32xf32>
    %cst = arith.constant 0.176776692 : f32
    %12 = vector.broadcast %cst : f32 to vector<48x32xf32>
    %13 = arith.mulf %11, %12 : vector<48x32xf32>
    %cst_6 = arith.constant 0.000000e+00 : f32
    %14 = vector.broadcast %cst_6 : f32 to vector<48x32xf32>
    %15 = vector.shape_cast %5 : vector<48x1xi1> to vector<48x1xi1>
    %16 = vector.broadcast %15 : vector<48x1xi1> to vector<48x32xi1>
    %17 = arith.select %16, %9, %14 : vector<48x32xi1>, vector<48x32xf32>
    %18 = vector.shape_cast %7 : vector<48x1xi1> to vector<48x1xi1>
    %19 = vector.broadcast %18 : vector<48x1xi1> to vector<48x32xi1>
    %20 = arith.select %19, %13, %17 : vector<48x32xi1>, vector<48x32xf32>
    %cst_7 = arith.constant 5.65685415 : f32
    %21 = vector.broadcast %cst_7 : f32 to vector<48x32xf32>
    %22 = arith.mulf %20, %21 : vector<48x32xf32>
    %23 = arith.mulf %22, %22 : vector<48x32xf32>
    %cst_8 = arith.constant dense<0.000000e+00> : vector<48xf32>
    %24 = vector.multi_reduction <add>, %23, %cst_8 [1] : vector<48x32xf32> to vector<48xf32>
    %25 = vector.shape_cast %24 : vector<48xf32> to vector<48x1xf32>
    %cst_9 = arith.constant 3.200000e+01 : f32
    %26 = vector.broadcast %cst_9 : f32 to vector<48x1xf32>
    %27 = arith.divf %25, %26 : vector<48x1xf32>
    %cst_10 = arith.constant 9.99999997E-7 : f32
    %28 = vector.broadcast %cst_10 : f32 to vector<48x1xf32>
    %29 = arith.addf %27, %28 : vector<48x1xf32>
    %30 = math.rsqrt %29 : vector<48x1xf32>
    %31 = vector.broadcast %30 : vector<48x1xf32> to vector<48x32xf32>
    %32 = arith.mulf %22, %31 : vector<48x32xf32>
    %c0_11 = arith.constant 0 : index
    %c0_12 = arith.constant 0 : index
    %33 = vector.load %arg5[%c0_11, %c0_12] : memref<1x32xbf16, #tpu.memory_space<vmem>>, vector<1x32xbf16>
    %34 = arith.extf %33 : vector<1x32xbf16> to vector<1x32xf32>
    %cst_13 = arith.constant 1.000000e+00 : f32
    %35 = vector.broadcast %cst_13 : f32 to vector<1x32xf32>
    %36 = arith.addf %35, %34 : vector<1x32xf32>
    %37 = vector.broadcast %36 : vector<1x32xf32> to vector<48x32xf32>
    %38 = arith.mulf %32, %37 : vector<48x32xf32>
    %39 = arith.truncf %38 : vector<48x32xf32> to vector<48x32xbf16>
    %c0_14 = arith.constant 0 : index
    %c0_15 = arith.constant 0 : index
    %40 = vector.load %arg6[%c0_14, %c0_15] : memref<32x128xbf16, #tpu.memory_space<vmem>>, vector<32x128xbf16>
    %cst_16 = arith.constant dense<0.000000e+00> : vector<48x128xf32>
    %41 = tpu.matmul %39, %40, %cst_16 {dimension_numbers = #tpu.dot_dimension_numbers<[1], [0], [0], [1], [0, 0, 1, 1], [], []>} : vector<48x32xbf16>, vector<32x128xbf16>, vector<48x128xf32> -> vector<48x128xf32>
    %c0_17 = arith.constant 0 : index
    %c0_18 = arith.constant 0 : index
    %42 = vector.load %arg7[%c0_17, %c0_18] : memref<48x128xf32, #tpu.memory_space<vmem>>, vector<48x128xf32>
    tpu.vector_store %arg7[%c0_17, %c0_18], %41 {strides = array<i32>} : memref<48x128xf32, #tpu.memory_space<vmem>>, vector<48x128xf32>,
    return
  }
  func.func @transform_0(%arg0: i32, %arg1: i32) -> (i32, i32) {
    %c0_i32 = arith.constant 0 : i32
    %c0_i32_0 = arith.constant 0 : i32
    return %arg0, %c0_i32 : i32, i32
  }
  func.func @transform_1(%arg0: i32, %arg1: i32) -> (i32, i32) {
    %c0_i32 = arith.constant 0 : i32
    %c0_i32_0 = arith.constant 0 : i32
    return %arg0, %c0_i32 : i32, i32
  }
  func.func @transform_2(%arg0: i32, %arg1: i32) -> (i32, i32) {
    %c0_i32 = arith.constant 0 : i32
    %c0_i32_0 = arith.constant 0 : i32
    return %arg0, %c0_i32 : i32, i32
  }
  func.func @transform_3(%arg0: i32, %arg1: i32) -> (i32, i32) {
    %c0_i32 = arith.constant 0 : i32
    %c0_i32_0 = arith.constant 0 : i32
    %c0_i32_1 = arith.constant 0 : i32
    return %c0_i32, %c0_i32_0 : i32, i32
  }
  func.func @transform_4(%arg0: i32, %arg1: i32) -> (i32, i32) {
    %c0_i32 = arith.constant 0 : i32
    %c0_i32_0 = arith.constant 0 : i32
    return %c0_i32, %arg1 : i32, i32
  }
  func.func @transform_5(%arg0: i32, %arg1: i32) -> (i32, i32) {
    %c0_i32 = arith.constant 0 : i32
    return %arg0, %arg1 : i32, i32
  }
}

</mosaic_0001>

<bundles_post_ra>
// kernel: _lambda_.4
= control target key start
LH: loop header
LB: loop body
LE: loop exit
PB: predicated region body
PF: predicated region fallthrough
CT: control target
= control target key end

     0   :  { %v173_v10 = vlaneseq  ;;  %s333_s1 = inlined_call_operand.vmem [shape: bf16[128,128], index: 1, kind: input, shape index: {}]   ;;  %s334_s0 = inlined_call_operand.vmem [shape: bf16[32,128], index: 0, kind: input, shape index: {}]   ;;  %s335_s2 = inlined_call_operand.vmem [shape: bf16[1,128], index: 2, kind: input, shape index: {}]   ;;  %s336_s3 = inlined_call_operand.vmem [shape: bf16[32,128], index: 3, kind: output, shape index: {}]  }
   0x1   :  { %v264_v0 = vld [vmem:[%s333_s1 + $0x38] sm:$0xff]   ;;  %v265_v1 = vld [vmem:[%s333_s1 + $0x30] sm:$0xff]   ;;  %v266_v2 = vld [vmem:[%s333_s1 + $0x28] sm:$0xff]  }
   0x2   :  { %244 = vmatprep.subr.bf16.mxu0 %v264_v0  ;;  %v267_v3 = vld [vmem:[%s333_s1 + $0x20] sm:$0xff]   ;;  %v268_v5 = vld [vmem:[%s333_s1 + $0x18] sm:$0xff]   ;;  %v269_v6 = vld [vmem:[%s333_s1 + $0x10] sm:$0xff]   ;;  %v174_v11 = vshrl.u32 %v173_v10, 7 }
   0x3   :  { %245 = vmatpush3.bf16.msra.mxu0 %v264_v0  ;;  %v272_v4 = vld [vmem:[%s334_s0] sm:$0xff]   ;;  %v270_v7 = vld [vmem:[%s333_s1 + $0x8] sm:$0xff]  }
   0x4   :  { %246 = vmatprep.subr.bf16.mxu0 %v265_v1  ;;  %260 = vmatprep.mubr.bf16.mxu0 %v272_v4  ;;  %v271_v8 = vld [vmem:[%s333_s1] sm:$0xff]   ;;  %v273_v9 = vld [vmem:[%s334_s0 + $0x8] sm:$0xff]   ;;  %v175_v14 = vsub.s32 0, %v174_v11 }
   0x5   :  { %v171_v12 = vld [vmem:[%s335_s2] sm:$0x1] }
   0x6   :  { %v172_v13 = vunpack.c.l.bf16 %v171_v12 }
   0x7   :  { %247 = vmatpush3.bf16.msra.mxu0 %v265_v1 }
   0x8   :  { %248 = vmatprep.subr.bf16.mxu0 %v266_v2  ;;  %v176_v16 = vrot.slane %v172_v13, %v175_v14 }
   0xb   :  { %249 = vmatpush3.bf16.msra.mxu0 %v266_v2 }
   0xc   :  { %250 = vmatprep.subr.bf16.mxu0 %v267_v3 }
   0xf   :  { %251 = vmatpush3.bf16.msra.mxu0 %v267_v3 }
  0x10   :  { %252 = vmatprep.subr.bf16.mxu0 %v268_v5 }
  0x13   :  { %253 = vmatpush3.bf16.msra.mxu0 %v268_v5 }
  0x14   :  { %254 = vmatprep.subr.bf16.mxu0 %v269_v6 }
  0x17   :  { %255 = vmatpush3.bf16.msra.mxu0 %v269_v6 }
  0x18   :  { %256 = vmatprep.subr.bf16.mxu0 %v270_v7 }
  0x1b   :  { %257 = vmatpush3.bf16.msra.mxu0 %v270_v7 }
  0x1c   :  { %258 = vmatprep.subr.bf16.mxu0 %v271_v8 }
  0x1f   :  { %259 = vmatpush3.bf16.msra.mxu0 %v271_v8 }
  0x22   :  { %261 = vmatmul.mubr.bf16.vlgmr.msra.gmra.mxu0 %v273_v9 }
  0xe2   :  { %v262_v15 = vpop.f32.mrf.mxu0 }
  0xe3   :  { %v179_v19 = vadd.f32 %v262_v15, %v176_v16 }
  0xe4   :  { %v141_v17 = vpop.f32.mrf.mxu0 }
  0xe5   :  { %v177_v22 = vadd.f32 %v176_v16, %v141_v17 }
  0xe6   :  { %v263_v18 = vpop.f32.mrf.mxu0 }
  0xe7   :  { %v180_v20 = vadd.f32 %v263_v18, %v176_v16 }
  0xe8   :  { %v144_v21 = vpop.f32.mrf.mxu0 }
  0xe9   :  { %v231_v23 = vpack.c.bf16 %v180_v20, %v179_v19  ;;  %v178_v24 = vadd.f32 %v176_v16, %v144_v21 }
  0xeb   :  { %233 = vst [vmem:[%s336_s3 + $0x8] sm:$0xff] %v231_v23   ;;  %v226_v25 = vpack.c.bf16 %v178_v24, %v177_v22 }
  0xed   :  { %227 = vst [vmem:[%s336_s3] sm:$0xff] %v226_v25  }

// kernel: _lambda_.5
= control target key start
LH: loop header
LB: loop body
LE: loop exit
PB: predicated region body
PF: predicated region fallthrough
CT: control target
= control target key end

     0   :  { %vm22_vm0 = vcmask 261120   ;;  %v78_v35 = vlaneseq  ;;  %vm112_vm1 = vcmask 257024   ;;  %s202_s0 = inlined_call_operand.vmem [shape: bf16[32,32], index: 0, kind: input, shape index: {}]   ;;  %s203_s1 = inlined_call_operand.vmem [shape: bf16[1,32], index: 1, kind: input, shape index: {}]   ;;  %s204_s2 = inlined_call_operand.vmem [shape: bf16[1,32], index: 2, kind: input, shape index: {}]   ;;  %s205_s3 = inlined_call_operand.vmem [shape: bf16[32,32], index: 3, kind: output, shape index: {}]  }
   0x1   :  { %v130_v0 = vld [vmem:[%s202_s0] sm:$0xff]   ;;  %v137_v1 = vld [vmem:[%s202_s0 + $0x8] sm:$0xff]  }
   0x2   :  { %v131_v2 = vunpack.c.l.bf16 %v130_v0  ;;  %v135_v3 = vunpack.c.l.bf16 %v137_v1  ;;  %v132_v4 = vunpack.c.h.bf16 %v130_v0  ;;  %v136_v5 = vunpack.c.h.bf16 %v137_v1  ;;  %v76_v43 = vld [vmem:[%s203_s1] sm:$0x1] }
   0x3   :  { %v79_v41 = vshrl.u32 %v78_v35, 7  ;;  %v86_v45 = vld [vmem:[%s204_s2] sm:$0x1]  ;;  %v77_v46 = vunpack.c.l.bf16 %v76_v43 }
   0x4   :  { %v23_v6 = vsel %vm22_vm0, %v131_v2, 0.0  ;;  %v29_v7 = vsel %vm22_vm0, %v135_v3, 0.0  ;;  %v26_v8 = vsel %vm22_vm0, %v132_v4, 0.0  ;;  %v32_v9 = vsel %vm22_vm0, %v136_v5, 0.0 }
   0x5   :  { %24 = vadd.xlane.f32.xlu0 %v23_v6  ;;  %30 = vadd.xlane.f32.xlu1 %v29_v7  ;;  %v80_v47 = vsub.s32 0, %v79_v41  ;;  %v87_v48 = vunpack.c.l.bf16 %v86_v45 }
   0x7   :  { %v81_v49 = vrot.slane %v77_v46, %v80_v47  ;;  %v91_v51 = vrot.slane %v87_v48, %v80_v47 }
   0x9   :  { %27 = vadd.xlane.f32.xlu0 %v26_v8  ;;  %33 = vadd.xlane.f32.xlu1 %v32_v9 }
  0x8e   :  { %v25_v10 = vpop.xlane.xlu0 %24  ;;  %v31_v11 = vpop.xlane.xlu1 %30 }
  0x8f   :  { %v36_v12 = vmul.f32 0.03125, %v25_v10  ;;  %v38_v13 = vmul.f32 0.03125, %v31_v11 }
  0x91   :  { %v40_v14 = vsub.f32 %v131_v2, %v36_v12  ;;  %v42_v15 = vsub.f32 %v135_v3, %v38_v13 }
  0x92   :  { %v28_v16 = vpop.xlane.xlu0 %27  ;;  %v34_v17 = vpop.xlane.xlu1 %33 }
  0x93   :  { %v37_v18 = vmul.f32 0.03125, %v28_v16  ;;  %v39_v19 = vmul.f32 0.03125, %v34_v17  ;;  %v44_v20 = vmul.f32 %v40_v14, %v40_v14  ;;  %v46_v21 = vmul.f32 %v42_v15, %v42_v15 }
  0x95   :  { %v41_v22 = vsub.f32 %v132_v4, %v37_v18  ;;  %v43_v23 = vsub.f32 %v136_v5, %v39_v19  ;;  %v48_v24 = vsel %vm22_vm0, %v44_v20, 0.0  ;;  %v54_v25 = vsel %vm22_vm0, %v46_v21, 0.0 }
  0x96   :  { %49 = vadd.xlane.f32.xlu0 %v48_v24 }
  0x97   :  { %v45_v26 = vmul.f32 %v41_v22, %v41_v22  ;;  %v47_v27 = vmul.f32 %v43_v23, %v43_v23 }
  0x99   :  { %v51_v28 = vsel %vm22_vm0, %v45_v26, 0.0  ;;  %v57_v29 = vsel %vm22_vm0, %v47_v27, 0.0 }
  0x9a   :  { %55 = vadd.xlane.f32.xlu0 %v54_v25  ;;  %52 = vadd.xlane.f32.xlu1 %v51_v28 }
  0x9e   :  { %58 = vadd.xlane.f32.xlu1 %v57_v29 }
 0x11f   :  { %v50_v30 = vpop.xlane.xlu0 %49 }
 0x120   :  { %v60_v31 = vmul.f32 0.03125, %v50_v30 }
 0x122   :  { %v64_v32 = vadd.f32 1e-06, %v60_v31 }
 0x123   :  { %v53_v33 = vpop.xlane.xlu1 %52  ;;  %v56_v34 = vpop.xlane.xlu0 %55 }
 0x124   :  { %138 = vrsqrt.f32 %v64_v32  ;;  %v61_v36 = vmul.f32 0.03125, %v53_v33  ;;  %v62_v37 = vmul.f32 0.03125, %v56_v34 }
 0x126   :  { %v65_v38 = vadd.f32 1e-06, %v61_v36  ;;  %v66_v39 = vadd.f32 1e-06, %v62_v37 }
 0x127   :  { %v59_v40 = vpop.xlane.xlu1 %58 }
 0x128   :  { %140 = vrsqrt.f32 %v65_v38  ;;  %v63_v42 = vmul.f32 0.03125, %v59_v40 }
 0x129   :  { %142 = vrsqrt.f32 %v66_v39 }
 0x12a   :  { %v67_v44 = vadd.f32 1e-06, %v63_v42 }
 0x12c   :  { %144 = vrsqrt.f32 %v67_v44 }
 0x131   :  { %v139_v50 = vpop.eup %138 }
 0x132   :  { %v72_v52 = vmul.f32 %v139_v50, %v40_v14 }
 0x134   :  { %v82_v53 = vmul.f32 %v81_v49, %v72_v52 }
 0x135   :  { %v141_v54 = vpop.eup %140 }
 0x136   :  { %v143_v55 = vpop.eup %142  ;;  %v92_v56 = vadd.f32 %v91_v51, %v82_v53  ;;  %v73_v57 = vmul.f32 %v141_v54, %v41_v22 }
 0x137   :  { %v74_v58 = vmul.f32 %v143_v55, %v42_v15 }
 0x138   :  { %v125_v59 = vpack.c.bf16 %v92_v56, %v92_v56  ;;  %v83_v60 = vmul.f32 %v81_v49, %v73_v57 }
 0x139   :  { %v145_v61 = vpop.eup %144  ;;  %v84_v62 = vmul.f32 %v81_v49, %v74_v58 }
 0x13a   :  { %113 = vst.msk [vmem:[%s205_s3] sm:$0xf] %vm112_vm1, %v125_v59  ;;  %v93_v63 = vadd.f32 %v91_v51, %v83_v60  ;;  %v75_v0 = vmul.f32 %v145_v61, %v43_v23 }
 0x13b   :  { %v94_v1 = vadd.f32 %v91_v51, %v84_v62 }
 0x13c   :  { %v126_v2 = vpack.c.bf16 %v93_v63, %v93_v63  ;;  %v85_v3 = vmul.f32 %v81_v49, %v75_v0 }
 0x13d   :  { %v127_v4 = vpack.c.bf16 %v94_v1, %v94_v1 }
 0x13e   :  { %114 = vst.msk [vmem:[%s205_s3 + $0x4] sm:$0xf] %vm112_vm1, %v126_v2  ;;  %v95_v5 = vadd.f32 %v91_v51, %v85_v3 }
 0x13f   :  { %115 = vst.msk [vmem:[%s205_s3 + $0x8] sm:$0xf] %vm112_vm1, %v127_v4 }
 0x140   :  { %v128_v6 = vpack.c.bf16 %v95_v5, %v95_v5 }
 0x142   :  { %116 = vst.msk [vmem:[%s205_s3 + $0xc] sm:$0xf] %vm112_vm1, %v128_v6 }

// kernel: _lambda_.7
= control target key start
LH: loop header
LB: loop body
LE: loop exit
PB: predicated region body
PF: predicated region fallthrough
CT: control target
= control target key end

     0   :  { %v432_v3 = vmov 0   ;;  %s558_s0 = inlined_call_operand.vmem [shape: s32[48,1], index: 0, kind: input, shape index: {}]   ;;  %s559_s1 = inlined_call_operand.vmem [shape: bf16[48,32], index: 1, kind: input, shape index: {}]   ;;  %s560_s2 = inlined_call_operand.vmem [shape: bf16[48,32], index: 2, kind: input, shape index: {}]   ;;  %s561_s3 = inlined_call_operand.vmem [shape: bf16[1,32], index: 3, kind: input, shape index: {}]   ;;  %s562_s4 = inlined_call_operand.vmem [shape: bf16[32,128], index: 4, kind: input, shape index: {}]   ;;  %s563_s5 = inlined_call_operand.hbm [shape: f32[48,128], index: 5, kind: output, shape index: {}]  }
   0x1   :  { %v24_v0 = vld [vmem:[%s558_s0 + $0x10] sm:$0xff]  ;;  %v25_v1 = vld [vmem:[%s558_s0 + $0x18] sm:$0xff]  ;;  %v23_v2 = vld [vmem:[%s558_s0 + $0x8] sm:$0xff]  ;;  %394 = vset.pattern.permute.xlu1 %v432_v3  ;;  %395 = vset.pattern.permute.xlu0 %v432_v3 }
   0x2   :  { %vm48_vm0 = vcmp.eq.s32.totalorder %v24_v0, 100  ;;  %vm30_vm1 = vcmp.ne.s32.totalorder %v24_v0, 100  ;;  %vm36_vm2 = vcmp.ne.s32.totalorder %v24_v0, 4294967295  ;;  %vm49_vm3 = vcmp.eq.s32.totalorder %v25_v1, 100  ;;  %v22_v4 = vld [vmem:[%s558_s0] sm:$0xff]  ;;  %v27_v7 = vld [vmem:[%s558_s0 + $0x28] sm:$0xff] }
   0x3   :  { %v120_v5 = vsel %vm48_vm0, 1, %v432_v3  ;;  %vm42_vm4 = vmand %vm30_vm1, %vm36_vm2  ;;  %vm31_vm5 = vcmp.ne.s32.totalorder %v25_v1, 100  ;;  %vm37_vm6 = vcmp.ne.s32.totalorder %v25_v1, 4294967295  ;;  %vm29_vm8 = vcmp.ne.s32.totalorder %v23_v2, 100  ;;  %v26_v9 = vld [vmem:[%s558_s0 + $0x20] sm:$0xff] }
   0x4   :  { %131 = vperm.xlu1 %394, %v120_v5   ;;  %v84_v6 = vsel %vm42_vm4, 1, %v432_v3  ;;  %vm43_vm7 = vmand %vm31_vm5, %vm37_vm6  ;;  %vm35_vm9 = vcmp.ne.s32.totalorder %v23_v2, 4294967295  ;;  %vm28_vm10 = vcmp.ne.s32.totalorder %v22_v4, 100  ;;  %v121_v8 = vsel %vm49_vm3, 1, %v432_v3 }
   0x5   :  { %95 = vperm.xlu0 %395, %v84_v6   ;;  %vm34_vm11 = vcmp.ne.s32.totalorder %v22_v4, 4294967295  ;;  %v85_v10 = vsel %vm43_vm7, 1, %v432_v3  ;;  %vm41_vm12 = vmand %vm29_vm8, %vm35_vm9  ;;  %vm33_vm14 = vcmp.ne.s32.totalorder %v27_v7, 100  ;;  %vm39_vm15 = vcmp.ne.s32.totalorder %v27_v7, 4294967295 }
   0x6   :  { %vm40_vm13 = vmand %vm28_vm10, %vm34_vm11  ;;  %vm32_vm0 = vcmp.ne.s32.totalorder %v26_v9, 100  ;;  %vm38_vm1 = vcmp.ne.s32.totalorder %v26_v9, 4294967295  ;;  %v83_v11 = vsel %vm41_vm12, 1, %v432_v3 }
   0x8   :  { %134 = vperm.xlu1 %394, %v121_v8  }
   0x9   :  { %98 = vperm.xlu0 %395, %v85_v10  }
   0xa   :  { %10 = vsyncpa [#allocation3], 0  ;;  %v82_v12 = vsel %vm40_vm13, 1, %v432_v3  ;;  %vm47_vm3 = vcmp.eq.s32.totalorder %v23_v2, 100  ;;  %vm46_vm5 = vcmp.eq.s32.totalorder %v22_v4, 100  ;;  %vm51_vm6 = vcmp.eq.s32.totalorder %v27_v7, 100 }
   0xb   :  { %vm45_vm2 = vmand %vm33_vm14, %vm39_vm15  ;;  %v119_v15 = vsel %vm47_vm3, 1, %v432_v3  ;;  %v118_v16 = vsel %vm46_vm5, 1, %v432_v3  ;;  %vm50_vm7 = vcmp.eq.s32.totalorder %v26_v9, 100  ;;  %v123_v17 = vsel %vm51_vm6, 1, %v432_v3  ;;  %v361_v19 = vld [vmem:[%s560_s2 + $0x8] sm:$0xff]   ;;  %v348_v36 = vld [vmem:[%s560_s2] sm:$0xff]  }
   0xc   :  { %vm44_vm4 = vmand %vm32_vm0, %vm38_vm1  ;;  %92 = vperm.xlu1 %394, %v83_v11   ;;  %v87_v13 = vsel %vm45_vm2, 1, %v432_v3  ;;  %v122_v18 = vsel %vm50_vm7, 1, %v432_v3  ;;  %v359_v20 = vld [vmem:[%s559_s1 + $0x8] sm:$0xff]   ;;  %v353_v21 = vunpack.c.l.bf16 %v361_v19  ;;  %v354_v25 = vunpack.c.h.bf16 %v361_v19  ;;  %v336_v42 = vld [vmem:[%s559_s1] sm:$0xff]  }
   0xd   :  { %89 = vperm.xlu0 %395, %v82_v12   ;;  %v86_v14 = vsel %vm44_vm4, 1, %v432_v3  ;;  %v341_v22 = vunpack.c.l.bf16 %v359_v20  ;;  %v342_v28 = vunpack.c.h.bf16 %v359_v20  ;;  %vm166_vm12 = vcmask 261120   ;;  %v362_v44 = vld [vmem:[%s560_s2 + $0x10] sm:$0xff]  }
   0xe   :  { %v78_v24 = vmul.f32 0.17677669, %v353_v21  ;;  %v79_v31 = vmul.f32 0.17677669, %v354_v25  ;;  %v350_v43 = vunpack.c.h.bf16 %v348_v36  ;;  %v349_v46 = vunpack.c.l.bf16 %v348_v36  ;;  %v360_v49 = vld [vmem:[%s559_s1 + $0x10] sm:$0xff]   ;;  %v396_v21 = vld [vmem:[%s562_s4 + $0x8] sm:$0xff]  }
   0xf   :  { %v338_v48 = vunpack.c.h.bf16 %v336_v42  ;;  %v358_v52 = vunpack.c.h.bf16 %v362_v44  ;;  %v337_v53 = vunpack.c.l.bf16 %v336_v42  ;;  %v357_v56 = vunpack.c.l.bf16 %v362_v44 }
  0x10   :  { %104 = vperm.xlu1 %394, %v87_v13   ;;  %v77_v54 = vmul.f32 0.17677669, %v350_v43  ;;  %v76_v55 = vmul.f32 0.17677669, %v349_v46  ;;  %v346_v57 = vunpack.c.h.bf16 %v360_v49  ;;  %v345_v60 = vunpack.c.l.bf16 %v360_v49 }
  0x11   :  { %101 = vperm.xlu0 %395, %v86_v14   ;;  %v81_v62 = vmul.f32 0.17677669, %v358_v52  ;;  %v80_v2 = vmul.f32 0.17677669, %v357_v56  ;;  %vm434_vm5 = vmmov 0  }
  0x14   :  { %128 = vperm.xlu1 %394, %v119_v15  }
  0x15   :  { %125 = vperm.xlu0 %395, %v118_v16  }
  0x18   :  { %140 = vperm.xlu1 %394, %v123_v17  }
  0x19   :  { %137 = vperm.xlu0 %395, %v122_v18  }
  0x7f   :  { %v132_v23 = vpop.permute.xlu1 %131 }
  0x80   :  { %vm144_vm8 = vcmp.eq.s32.totalorder %v132_v23, 1  ;;  %v96_v26 = vpop.permute.xlu0 %95  ;;  %v397_v23 = vld [vmem:[%s562_s4] sm:$0xff]  }
  0x81   :  { %vm108_vm9 = vcmp.eq.s32.totalorder %v96_v26, 1 }
  0x82   :  { %v114_v27 = vsel %vm108_vm9, %v341_v22, 0.0  ;;  %v433_v22 = vmov 0.0  }
  0x83   :  { %v150_v29 = vsel %vm144_vm8, %v78_v24, %v114_v27  ;;  %v135_v30 = vpop.permute.xlu1 %134  ;;  %384 = vmatprep.subr.bf16.mxu1 %v433_v22  ;;  %368 = vmatprep.subr.bf16.mxu0 %v433_v22 }
  0x84   :  { %v492_v32 = vmul.f32 5.656854, %v150_v29  ;;  %vm145_vm10 = vcmp.eq.s32.totalorder %v135_v30, 1  ;;  %v99_v33 = vpop.permute.xlu0 %98  ;;  %386 = vmatpush3.bf16.msra.mxu1 %v396_v21  ;;  %369 = vmatpush3.bf16.msra.mxu0 %v396_v21  ;;  %v213_v30 = vlaneseq }
  0x85   :  { %vm109_vm11 = vcmp.eq.s32.totalorder %v99_v33, 1  ;;  %385 = vmatprep.subr.bf16.mxu1 %v433_v22  ;;  %370 = vmatprep.subr.bf16.mxu0 %v433_v22 }
  0x86   :  { %v115_v34 = vsel %vm109_vm11, %v342_v28, 0.0  ;;  %v162_v35 = vmul.f32 %v492_v32, %v492_v32  ;;  %376 = vmatprep.mubr.msk.bf16.mxu1 %vm434_vm5, %v433_v22  ;;  %372 = vmatprep.mubr.msk.bf16.mxu0 %vm434_vm5, %v433_v22 }
  0x87   :  { %v151_v37 = vsel %vm145_vm10, %v79_v31, %v115_v34  ;;  %v93_v38 = vpop.permute.xlu1 %92  ;;  %v210_v31 = vld [vmem:[%s561_s3] sm:$0x1]  ;;  %v214_v34 = vshrl.u32 %v213_v30, 7  ;;  %s435_s3 = smov [#allocation2]  }
  0x88   :  { %v499_v39 = vmul.f32 5.656854, %v151_v37  ;;  %v90_v40 = vpop.permute.xlu0 %89  ;;  %v173_v41 = vsel %vm166_vm12, %v162_v35, 0.0  ;;  %vm107_vm13 = vcmp.eq.s32.totalorder %v93_v38, 1  ;;  %387 = vmatpush3.bf16.msra.mxu1 %v397_v23  ;;  %371 = vmatpush3.bf16.msra.mxu0 %v397_v23  ;;  %v211_v33 = vunpack.c.l.bf16 %v210_v31  ;;  %s319_s4 = sshll.u32 %s435_s3, 4  ;;  %s320_s4 = int_to_ptr.vmem [resolvable:$true] %s319_s4 }
  0x89   :  { %174 = vadd.xlane.f32.xlu0 %v173_v41  ;;  %vm106_vm14 = vcmp.eq.s32.totalorder %v90_v40, 1  ;;  %v113_v59 = vsel %vm107_vm13, %v338_v48, 0.0  ;;  %v215_v38 = vsub.s32 0, %v214_v34  ;;  %s410_s20 = scalar_lea.vmem %s320_s4, 768  ;;  %p415_p1 = scmp.lt.s32.totalorder %s320_s4, %s320_s4 }
  0x8a   :  { %v163_v45 = vmul.f32 %v499_v39, %v499_v39  ;;  %v112_v63 = vsel %vm106_vm14, %v337_v53, 0.0  ;;  %v212_v37 = vadd.f32 1.0, %v211_v33  ;;  %p411_p0 = scmp.ne.s32.totalorder %s320_s4, %s410_s20  ;;  %p416_p2 = scmp.lt.s32.totalorder %s410_s20, %s410_s20 }
  0x8b   :  { %v105_v47 = vpop.permute.xlu1 %104 }
  0x8c   :  { %v102_v50 = vpop.permute.xlu0 %101  ;;  %v176_v51 = vsel %vm166_vm12, %v163_v45, 0.0  ;;  %vm111_vm0 = vcmp.eq.s32.totalorder %v105_v47, 1  ;;  %v216_v47 = vrot.slane %v212_v37, %v215_v38  ;;  %p417_p3 = por %p416_p2, %p415_p1 }
  0x8d   :  { %177 = vadd.xlane.f32.xlu1 %v176_v51  ;;  %vm110_vm2 = vcmp.eq.s32.totalorder %v102_v50, 1  ;;  %v117_v6 = vsel %vm111_vm0, %v346_v57, 0.0 }
  0x8e   :  { %v116_v8 = vsel %vm110_vm2, %v345_v60, 0.0  ;;  %p418_p4 = pnand %p417_p3, %p411_p0 }
  0x8f   :  { %v129_v58 = vpop.permute.xlu1 %128 }
  0x90   :  { %vm143_vm15 = vcmp.eq.s32.totalorder %v129_v58, 1  ;;  %v126_v61 = vpop.permute.xlu0 %125 }
  0x91   :  { %v149_v0 = vsel %vm143_vm15, %v77_v54, %v113_v59  ;;  %vm142_vm1 = vcmp.eq.s32.totalorder %v126_v61, 1 }
  0x92   :  { %v148_v1 = vsel %vm142_vm1, %v76_v55, %v112_v63  ;;  %v514_v3 = vmul.f32 5.656854, %v149_v0 }
  0x93   :  { %v516_v4 = vmul.f32 5.656854, %v148_v1  ;;  %v141_v5 = vpop.permute.xlu1 %140 }
  0x94   :  { %vm147_vm4 = vcmp.eq.s32.totalorder %v141_v5, 1  ;;  %v138_v7 = vpop.permute.xlu0 %137  ;;  %v161_v15 = vmul.f32 %v514_v3, %v514_v3 }
  0x95   :  { %v153_v9 = vsel %vm147_vm4, %v81_v62, %v117_v6  ;;  %vm146_vm3 = vcmp.eq.s32.totalorder %v138_v7, 1  ;;  %v160_v10 = vmul.f32 %v516_v4, %v516_v4 }
  0x96   :  { %v152_v11 = vsel %vm146_vm3, %v80_v2, %v116_v8  ;;  %v520_v12 = vmul.f32 5.656854, %v153_v9  ;;  %v170_v17 = vsel %vm166_vm12, %v161_v15, 0.0 }
  0x97   :  { %v522_v13 = vmul.f32 5.656854, %v152_v11  ;;  %v167_v14 = vsel %vm166_vm12, %v160_v10, 0.0 }
  0x98   :  { %168 = vadd.xlane.f32.xlu0 %v167_v14  ;;  %v165_v19 = vmul.f32 %v520_v12, %v520_v12 }
  0x99   :  { %v164_v16 = vmul.f32 %v522_v13, %v522_v13 }
  0x9a   :  { %v182_v20 = vsel %vm166_vm12, %v165_v19, 0.0 }
  0x9b   :  { %v179_v18 = vsel %vm166_vm12, %v164_v16, 0.0 }
  0x9c   :  { %171 = vadd.xlane.f32.xlu0 %v170_v17  ;;  %180 = vadd.xlane.f32.xlu1 %v179_v18 }
  0xa0   :  { %183 = vadd.xlane.f32.xlu0 %v182_v20 }
 0x112   :  { %v175_v24 = vpop.xlane.xlu0 %174 }
 0x113   :  { %v188_v25 = vmul.f32 0.03125, %v175_v24 }
 0x115   :  { %v194_v26 = vadd.f32 1e-06, %v188_v25 }
 0x116   :  { %v178_v27 = vpop.xlane.xlu1 %177 }
 0x117   :  { %398 = vrsqrt.f32 %v194_v26  ;;  %v189_v28 = vmul.f32 0.03125, %v178_v27 }
 0x119   :  { %v195_v29 = vadd.f32 1e-06, %v189_v28 }
 0x11b   :  { %400 = vrsqrt.f32 %v195_v29 }
 0x121   :  { %v169_v35 = vpop.xlane.xlu0 %168 }
 0x122   :  { %v186_v36 = vmul.f32 0.03125, %v169_v35 }
 0x124   :  { %v399_v40 = vpop.eup %398  ;;  %v192_v41 = vadd.f32 1e-06, %v186_v36 }
 0x125   :  { %v181_v42 = vpop.xlane.xlu1 %180  ;;  %v172_v43 = vpop.xlane.xlu0 %171  ;;  %v206_v46 = vmul.f32 %v399_v40, %v492_v32 }
 0x126   :  { %v190_v44 = vmul.f32 0.03125, %v181_v42  ;;  %v187_v45 = vmul.f32 0.03125, %v172_v43  ;;  %402 = vrsqrt.f32 %v192_v41 }
 0x127   :  { %v219_v54 = vmul.f32 %v216_v47, %v206_v46 }
 0x128   :  { %v401_v48 = vpop.eup %400  ;;  %v196_v49 = vadd.f32 1e-06, %v190_v44  ;;  %v193_v50 = vadd.f32 1e-06, %v187_v45 }
 0x129   :  { %v184_v51 = vpop.xlane.xlu0 %183  ;;  %v207_v52 = vmul.f32 %v401_v48, %v499_v39 }
 0x12a   :  { %404 = vrsqrt.f32 %v196_v49  ;;  %v191_v53 = vmul.f32 0.03125, %v184_v51 }
 0x12b   :  { %406 = vrsqrt.f32 %v193_v50  ;;  %v220_v55 = vmul.f32 %v216_v47, %v207_v52 }
 0x12c   :  { %v197_v56 = vadd.f32 1e-06, %v191_v53 }
 0x12d   :  { %v224_v57 = vpack.c.bf16 %v220_v55, %v219_v54 }
 0x12e   :  { %408 = vrsqrt.f32 %v197_v56 }
 0x12f   :  { %377 = vmatmul.mubr.msk.bf16.vlgmr.msra.gmra.mxu1 %vm166_vm12, %v224_v57 }
 0x130   :  { %380 = vmatprep.mubr.msk.bf16.mxu1 %vm434_vm5, %v433_v22 }
 0x133   :  { %v403_v32 = vpop.eup %402 }
 0x134   :  { %v204_v59 = vmul.f32 %v403_v32, %v516_v4 }
 0x136   :  { %v217_v63 = vmul.f32 %v216_v47, %v204_v59 }
 0x137   :  { %v405_v58 = vpop.eup %404 }
 0x138   :  { %v407_v60 = vpop.eup %406  ;;  %v208_v39 = vmul.f32 %v405_v58, %v522_v13 }
 0x139   :  { %v205_v61 = vmul.f32 %v407_v60, %v514_v3 }
 0x13a   :  { %v221_v5 = vmul.f32 %v216_v47, %v208_v39 }
 0x13b   :  { %v409_v62 = vpop.eup %408  ;;  %v218_v0 = vmul.f32 %v216_v47, %v205_v61 }
 0x13c   :  { %v209_v1 = vmul.f32 %v409_v62, %v520_v12 }
 0x13d   :  { %v223_v2 = vpack.c.bf16 %v218_v0, %v217_v63 }
 0x13e   :  { %v222_v6 = vmul.f32 %v216_v47, %v209_v1 }
 0x13f   :  { %373 = vmatmul.mubr.msk.bf16.vlgmr.msra.gmra.mxu0 %vm166_vm12, %v223_v2 }
 0x140   :  { %v225_v7 = vpack.c.bf16 %v222_v6, %v221_v5 }
 0x142   :  { %381 = vmatmul.mubr.msk.bf16.gmra.mxu1 %vm166_vm12, %v225_v7 }
 0x1ef   :  { %v293_v8 = vpop.f32.mrf.mxu1 }
 0x1f0   :  { %310 = vst [vmem:[#allocation2 + $0x10] sm:$0xff] %v293_v8 }
 0x1f1   :  { %v378_v4 = vpop.f32.mrf.mxu1 }
 0x1f3   :  { %v296_v9 = vpop.f32.mrf.mxu1 }
 0x1f4   :  { %311 = vst [vmem:[#allocation2 + $0x18] sm:$0xff] %v296_v9 }
 0x1f5   :  { %v379_v3 = vpop.f32.mrf.mxu1 }
 0x1ff   :  { %v285_v10 = vpop.f32.mrf.mxu0 }
 0x200   :  { %308 = vst [vmem:[#allocation2] sm:$0xff] %v285_v10 }
 0x201   :  { %v374_v11 = vpop.f32.mrf.mxu0 }
 0x202   :  { %v301_v12 = vpop.f32.mrf.mxu1 }
 0x203   :  { %v288_v13 = vpop.f32.mrf.mxu0  ;;  %312 = vst [vmem:[#allocation2 + $0x20] sm:$0xff] %v301_v12 }
 0x204   :  { %309 = vst [vmem:[#allocation2 + $0x8] sm:$0xff] %v288_v13  ;;  %v382_v14 = vpop.f32.mrf.mxu1 }
 0x205   :  { %v375_v15 = vpop.f32.mrf.mxu0 }
 0x206   :  { %v304_v16 = vpop.f32.mrf.mxu1 }
 0x207   :  { %313 = vst [vmem:[#allocation2 + $0x28] sm:$0xff] %v304_v16 }
 0x208   :  { %v383_v17 = vpop.f32.mrf.mxu1 }
 0x209   :  { %421 = shalt.err (!%p418_p4)
}
 0x20a   :  { %s436_s21 = smov 128   ;;  %s437_s22 = smov 8  }
 0x20b   :  { %325 = dma.vmem_to_hbm [thread:$0]  %s320_s4, 768, %s563_s5, [#allocation3], %s436_s21, %s436_s21, %s437_s22  }
 0x20c   :  { %430 = dma.done.wait [#allocation3], 768  }
 0x20d   :  { %431 = vsyncadd [#allocation3], 4294966528 }
 0x20e   :  { %329 = vsyncpa [#allocation3], 1 }

</bundles_post_ra>
